<compile_context>
chip_gen: v7x
topology: tpu7x:2x2x1
jax: 0.10.0
libtpu: 0.0.40
codegen_flags: <defaults>
</compile_context>

<pallas_src>
import functools

import jax
import jax.numpy as jnp
from jax.experimental import pallas as pl
from jax.experimental.pallas import tpu as pltpu

_LANE = 128  # each K/Q/V section of the fused weight is padded to this width


def _head_kernel(x_ref, w_ref, mask_ref, o_ref, *, scale, hp):
    # x_ref:    (bb, T, C)    bf16
    # w_ref:    (C, 3*hp)     bf16   [Wk^T|0  Wq^T|0  Wv^T|0]
    # mask_ref: (T, T)        f32    additive causal mask (0 / -inf)
    # o_ref:    (bb, T, hp)   f32    (only the first H lanes are meaningful)
    bb, T, C = x_ref.shape

    # Fused K|Q|V projection for the whole batch block in one MXU pass
    # (collapsing the leading/major dims is layout-free).
    x2 = x_ref[...].reshape(bb * T, C)
    kqv = jnp.dot(x2, w_ref[...], preferred_element_type=jnp.float32)
    kqv = kqv.reshape(bb, T, 3 * hp)

    # Slices at lane offsets 0 / 128 / 256 -> true views, no relayout.
    k = kqv[..., 0 * hp:1 * hp]
    q = kqv[..., 1 * hp:2 * hp]
    v = kqv[..., 2 * hp:3 * hp]

    # Scale q (narrow side) instead of the (T, T) score tile.
    q_bf = (q * scale).astype(jnp.bfloat16)
    k_bf = k.astype(jnp.bfloat16)

    # Scores: q @ k^T (zero-padded lanes contribute nothing).
    s = jnp.einsum("bqd,bkd->bqk", q_bf, k_bf,
                   preferred_element_type=jnp.float32)            # (bb, T, T)

    # Causal mask + numerically stable softmax numerator (all f32; v5e-safe).
    s = s + mask_ref[...][None, :, :]
    s = s - jnp.max(s, axis=-1, keepdims=True)
    p = jnp.exp(s)
    row_sum = jnp.sum(p, axis=-1, keepdims=True)                  # (bb, T, 1)

    # Unnormalized PV matmul, then normalize the narrow result with the EUP
    # approx reciprocal (division of the (T, T) tile avoided entirely).
    out = jnp.einsum("bqk,bkd->bqd",
                     p.astype(jnp.bfloat16), v.astype(jnp.bfloat16),
                     preferred_element_type=jnp.float32)          # (bb, T, hp)
    out = out * pl.reciprocal(row_sum, approx=True)
    o_ref[...] = out.astype(o_ref.dtype)


def _tensorcores_per_device():
    """Best-effort TensorCore count behind one JAX device (perf-only choice)."""
    try:
        kind = jax.devices()[0].device_kind.lower()
    except Exception:
        return 1
    # Inference chips (v5e / v6e) expose a single TensorCore per device; old
    # v2/v3 expose each core as its own device.
    if "lite" in kind or "v5e" in kind or "v6e" in kind:
        return 1
    if "v2" in kind or "v3" in kind:
        return 1
    # Megacore (v4 / v5p) and dual-TC (v7x): keep a parallel grid over batch.
    return 2


def head_forward(x, w_key, w_query, w_value):
    """x: (B, T, C) f32; w_*: (H, C) f32 (PyTorch nn.Linear weight layout)."""
    B, T, C = x.shape
    H = w_key.shape[0]
    HP = ((H + _LANE - 1) // _LANE) * _LANE          # padded section width

    def pad_section(w):                              # (H, C) -> (C, HP) bf16
        wt = w.T.astype(jnp.bfloat16)
        return jnp.pad(wt, ((0, 0), (0, HP - H)))

    # Fused transposed weight: (C, 3*HP) = [Wk^T|0  Wq^T|0  Wv^T|0].
    w_fused = jnp.concatenate(
        [pad_section(w_key), pad_section(w_query), pad_section(w_value)],
        axis=1)

    # Additive causal mask, built once; its block index is constant so the
    # pipeline only fetches it a single time per core.
    causal = jnp.tril(jnp.ones((T, T), dtype=bool))
    mask = jnp.where(causal, 0.0, -jnp.inf).astype(jnp.float32)

    # Whole batch per step on single-TC chips (fewer grid steps, bigger MXU M);
    # one batch element per step on dual-TC chips so "parallel" feeds both.
    cores = _tensorcores_per_device()
    bb = B if (cores <= 1 or B % cores != 0) else B // cores
    bb = max(bb, 1)
    grid = (B // bb,)

    kernel = functools.partial(_head_kernel, scale=float(H) ** -0.5, hp=HP)

    out_padded = pl.pallas_call(
        kernel,
        out_shape=jax.ShapeDtypeStruct((B, T, HP), jnp.float32),
        grid_spec=pltpu.PrefetchScalarGridSpec(
            num_scalar_prefetch=0,
            grid=grid,
            in_specs=[
                pl.BlockSpec((bb, T, C), lambda b: (b, 0, 0)),
                pl.BlockSpec((C, 3 * HP), lambda b: (0, 0)),
                pl.BlockSpec((T, T), lambda b: (0, 0)),
            ],
            out_specs=pl.BlockSpec((bb, T, HP), lambda b: (b, 0, 0)),
        ),
        compiler_params=pltpu.CompilerParams(
            # batch axis parallel -> second TensorCore on dual-TC chips
            dimension_semantics=("parallel",),
        ),
    )(x.astype(jnp.bfloat16), w_fused, mask)

    # Lane-dense stores inside the kernel; drop the zero padding outside.
    return out_padded[..., :H].astype(x.dtype)


def head_reference(x, w_key, w_query, w_value):
    """Pure-JAX f32 reference of the PyTorch forward (eval mode)."""
    k = x @ w_key.T
    q = x @ w_query.T
    v = x @ w_value.T
    s = (q @ jnp.swapaxes(k, -2, -1)) * (k.shape[-1] ** -0.5)
    T = x.shape[1]
    tril = jnp.tril(jnp.ones((T, T), dtype=bool))
    s = jnp.where(tril, s, -jnp.inf)
    w = jax.nn.softmax(s, axis=-1)
    return w @ v


if __name__ == "__main__":
    # Small shapes consistent with the module: block_size (max T) = 128,
    # reduced num_embeddings C = 64, head_size H = 32, batch B = 2.
    B, T, C, H = 2, 128, 64, 32

    key = jax.random.PRNGKey(0)
    kx, kk, kq, kv = jax.random.split(key, 4)

    x = jax.random.normal(kx, (B, T, C), dtype=jnp.float32)

    # Deterministic init mimicking nn.Linear default: U(-1/sqrt(C), 1/sqrt(C)),
    # weight shape (head_size, num_embeddings).
    bound = 1.0 / (C ** 0.5)
    w_key = jax.random.uniform(kk, (H, C), jnp.float32, -bound, bound)
    w_query = jax.random.uniform(kq, (H, C), jnp.float32, -bound, bound)
    w_value = jax.random.uniform(kv, (H, C), jnp.float32, -bound, bound)

    out = head_forward(x, w_key, w_query, w_value)
    out = jax.block_until_ready(out)

    ref = head_reference(x, w_key, w_query, w_value)
    assert out.shape == (B, T, H), out.shape
    # bf16 MXU inputs + approx reciprocal -> loosen tolerance vs pure-f32 ref.
    assert jnp.allclose(out, ref, atol=3e-2, rtol=3e-2), (
        float(jnp.max(jnp.abs(out - ref)))
    )

    print("KERNEL_OK")
</pallas_src>

<mosaic_0001>
module attributes {stable_mosaic.version = 11 : i64} {
  func.func @_head_kernel(%arg0: i32, %arg1: memref<1x128x64xbf16, #tpu.memory_space<vmem>>, %arg2: memref<64x384xbf16, #tpu.memory_space<vmem>>, %arg3: memref<128x128xf32, #tpu.memory_space<vmem>>, %arg4: memref<1x128x128xf32, #tpu.memory_space<vmem>>) attributes {dimension_semantics = [#tpu.dimension_semantics<parallel>], iteration_bounds = array<i64: 2>, scalar_prefetch = 0 : i64, scratch_operands = 0 : i64, tpu.core_type = #tpu.core_type<tc>, window_params = [{transform_indices = @transform_0, window_bounds = array<i64: 1, 128, 64>}, {pipeline_mode = #tpu.pipeline_mode<synchronous>, transform_indices = @transform_1, window_bounds = array<i64: 64, 384>}, {pipeline_mode = #tpu.pipeline_mode<synchronous>, transform_indices = @transform_2, window_bounds = array<i64: 128, 128>}, {transform_indices = @transform_3, window_bounds = array<i64: 1, 128, 128>}]} {
    %c0 = arith.constant 0 : index
    %c0_0 = arith.constant 0 : index
    %c0_1 = arith.constant 0 : index
    %0 = vector.load %arg1[%c0, %c0_0, %c0_1] : memref<1x128x64xbf16, #tpu.memory_space<vmem>>, vector<1x128x64xbf16>
    %1 = vector.shape_cast %0 : vector<1x128x64xbf16> to vector<128x64xbf16>
    %c0_2 = arith.constant 0 : index
    %c0_3 = arith.constant 0 : index
    %2 = vector.load %arg2[%c0_2, %c0_3] : memref<64x384xbf16, #tpu.memory_space<vmem>>, vector<64x384xbf16>
    %cst = arith.constant dense<0.000000e+00> : vector<128x384xf32>
    %3 = tpu.matmul %1, %2, %cst {dimension_numbers = #tpu.dot_dimension_numbers<[1], [0], [0], [1], [0, 0, 1, 1], [], []>} : vector<128x64xbf16>, vector<64x384xbf16>, vector<128x384xf32> -> vector<128x384xf32>
    %4 = vector.shape_cast %3 : vector<128x384xf32> to vector<1x128x384xf32>
    %5 = vector.extract_strided_slice %4 {offsets = [0, 0, 0], sizes = [1, 128, 128], strides = [1, 1, 1]} : vector<1x128x384xf32> to vector<1x128x128xf32>
    %6 = vector.extract_strided_slice %4 {offsets = [0, 0, 128], sizes = [1, 128, 128], strides = [1, 1, 1]} : vector<1x128x384xf32> to vector<1x128x128xf32>
    %7 = vector.extract_strided_slice %4 {offsets = [0, 0, 256], sizes = [1, 128, 128], strides = [1, 1, 1]} : vector<1x128x384xf32> to vector<1x128x128xf32>
    %cst_4 = arith.constant 0.176776692 : f32
    %8 = vector.broadcast %cst_4 : f32 to vector<1x128x128xf32>
    %9 = arith.mulf %6, %8 : vector<1x128x128xf32>
    %10 = arith.truncf %9 : vector<1x128x128xf32> to vector<1x128x128xbf16>
    %11 = arith.truncf %5 : vector<1x128x128xf32> to vector<1x128x128xbf16>
    "tpu.trace_start"() <{level = 10 : i32, message = "bqd,bkd->bqk"}> : () -> ()
    %cst_5 = arith.constant dense<0.000000e+00> : vector<1x128x128xf32>
    %12 = tpu.matmul %10, %11, %cst_5 {dimension_numbers = #tpu.dot_dimension_numbers<[2], [2], [1], [1], [0, 0, 0, 1, 1, 1], [0], [0]>} : vector<1x128x128xbf16>, vector<1x128x128xbf16>, vector<1x128x128xf32> -> vector<1x128x128xf32>
    "tpu.trace_stop"() : () -> ()
    %c0_6 = arith.constant 0 : index
    %c0_7 = arith.constant 0 : index
    %13 = vector.load %arg3[%c0_6, %c0_7] : memref<128x128xf32, #tpu.memory_space<vmem>>, vector<128x128xf32>
    %14 = vector.shape_cast %13 : vector<128x128xf32> to vector<1x128x128xf32>
    %15 = arith.addf %12, %14 : vector<1x128x128xf32>
    %cst_8 = arith.constant dense<0xFF800000> : vector<1x128xf32>
    %16 = vector.multi_reduction <maximumf>, %15, %cst_8 [2] : vector<1x128x128xf32> to vector<1x128xf32>
    %17 = vector.shape_cast %16 : vector<1x128xf32> to vector<1x128x1xf32>
    %18 = vector.broadcast %17 : vector<1x128x1xf32> to vector<1x128x128xf32>
    %19 = arith.subf %15, %18 : vector<1x128x128xf32>
    %20 = math.exp %19 : vector<1x128x128xf32>
    %cst_9 = arith.constant dense<0.000000e+00> : vector<1x128xf32>
    %21 = vector.multi_reduction <add>, %20, %cst_9 [2] : vector<1x128x128xf32> to vector<1x128xf32>
    %22 = vector.shape_cast %21 : vector<1x128xf32> to vector<1x128x1xf32>
    %23 = arith.truncf %20 : vector<1x128x128xf32> to vector<1x128x128xbf16>
    %24 = arith.truncf %7 : vector<1x128x128xf32> to vector<1x128x128xbf16>
    "tpu.trace_start"() <{level = 10 : i32, message = "bqk,bkd->bqd"}> : () -> ()
    %cst_10 = arith.constant dense<0.000000e+00> : vector<1x128x128xf32>
    %25 = tpu.matmul %23, %24, %cst_10 {dimension_numbers = #tpu.dot_dimension_numbers<[2], [1], [1], [2], [0, 0, 0, 1, 1, 2], [0], [0]>} : vector<1x128x128xbf16>, vector<1x128x128xbf16>, vector<1x128x128xf32> -> vector<1x128x128xf32>
    "tpu.trace_stop"() : () -> ()
    %26 = tpu.reciprocal %22 {approx = true} : vector<1x128x1xf32> -> vector<1x128x1xf32>
    %27 = vector.broadcast %26 : vector<1x128x1xf32> to vector<1x128x128xf32>
    %28 = arith.mulf %25, %27 : vector<1x128x128xf32>
    %c0_11 = arith.constant 0 : index
    %c0_12 = arith.constant 0 : index
    %c0_13 = arith.constant 0 : index
    %29 = vector.load %arg4[%c0_11, %c0_12, %c0_13] : memref<1x128x128xf32, #tpu.memory_space<vmem>>, vector<1x128x128xf32>
    tpu.vector_store %arg4[%c0_11, %c0_12, %c0_13], %28 {strides = array<i32>} : memref<1x128x128xf32, #tpu.memory_space<vmem>>, vector<1x128x128xf32>,
    return
  }
  func.func @transform_0(%arg0: i32) -> (i32, i32, i32) {
    %c0_i32 = arith.constant 0 : i32
    %c0_i32_0 = arith.constant 0 : i32
    %c0_i32_1 = arith.constant 0 : i32
    return %arg0, %c0_i32, %c0_i32_0 : i32, i32, i32
  }
  func.func @transform_1(%arg0: i32) -> (i32, i32) {
    %c0_i32 = arith.constant 0 : i32
    %c0_i32_0 = arith.constant 0 : i32
    %c0_i32_1 = arith.constant 0 : i32
    return %c0_i32, %c0_i32_0 : i32, i32
  }
  func.func @transform_2(%arg0: i32) -> (i32, i32) {
    %c0_i32 = arith.constant 0 : i32
    %c0_i32_0 = arith.constant 0 : i32
    %c0_i32_1 = arith.constant 0 : i32
    return %c0_i32, %c0_i32_0 : i32, i32
  }
  func.func @transform_3(%arg0: i32) -> (i32, i32, i32) {
    %c0_i32 = arith.constant 0 : i32
    %c0_i32_0 = arith.constant 0 : i32
    %c0_i32_1 = arith.constant 0 : i32
    return %arg0, %c0_i32, %c0_i32_0 : i32, i32, i32
  }
}

</mosaic_0001>

<bundles_post_ra>
// kernel: tpu_custom_call.1
= control target key start
LH: loop header
LB: loop body
LE: loop exit
PB: predicated region body
PF: predicated region fallthrough
CT: control target
= control target key end

     0   :  { %8 = vsyncpa [#allocation3], 0  ;;  %s1817_s0 = inlined_call_operand.vmem [shape: bf16[2,128,64], index: 0, kind: input, shape index: {}]   ;;  %s1818_s1 = inlined_call_operand.hbm [shape: bf16[64,384], index: 1, kind: input, shape index: {}]   ;;  %s1819_s2 = inlined_call_operand.vmem [shape: f32[128,128], index: 2, kind: input, shape index: {}]   ;;  %s1820_s3 = inlined_call_operand.hbm [shape: f32[2,128,128], index: 3, kind: output, shape index: {}]  }
   0x1   :  { %9 = vsyncpa [#allocation4], 0 }
   0x2   :  { %11 = vsyncpa [#allocation4 + $0x1], 0  ;;  %s1512_s12 = smov 0   ;;  %s1514_s13 = smov 0  }
   0x3   :  { %s1516_s14 = smov 0   ;;  %s1518_s15 = smov 0  }
   0x4 LB: > { %s1533_s16 = sadd.s32 4294967295, %s1483_s15   ;;  %s1062_s17 = sadd.s32 4294967294, %s1483_s15   ;;  %s1483_s15 = sphi %s1518_s15, %s1836_s15   ;;  %s1479_s14 = sphi %s1516_s14, %s1835_s14   ;;  %s1475_s13 = sphi %s1514_s13, %s1834_s13   ;;  %s1471_s12 = sphi %s1512_s12, %s1833_s12  }
   0x5   : > { %s1537_s18 = sadd.s32 1, %s1483_s15   ;;  %s92_s19 = sadd.s32 1, %s1479_s14 }
   0x6   : > { %s89_s20 = ssub.s32 %s1483_s15, %s1537_s18  ;;  %p102_p0 = scmp.ne.s32.totalorder %s1479_s14, %s1475_s13 }
   0x7   : > { %p90_p1 = scmp.eq.s32.totalorder %s89_s20, 0  ;;  %p103_p2 = scmp.eq.s32.totalorder %s1533_s16, 1 }
   0x8   : > { %p108_p3 = scmp.ne.s32.totalorder %s1475_s13, %s1471_s12  ;;  %p109_p4 = scmp.eq.s32.totalorder %s1062_s17, 1 }
   0x9   : > { %s1548_s21 = scalar_select %p90_p1, %s1479_s14, %s92_s19  }
   0xa   : > { %p1550_p5 = por %p103_p2, %p102_p0  ;;  %p1554_p6 = por %p109_p4, %p108_p3 }
   0xb   : > { %p1063_p7 = scmp.ge.s32.totalorder %s1483_s15, 1  ;;  %p116_p8 = scmp.lt.s32.totalorder %s1483_s15, 3 }
   0xc   : > { %s1824_s22 = scalar_select %p1550_p5, 1, 0 }
   0xd   : > { %s1825_s23 = scalar_select %p1554_p6, 1, 0 }
   0xe   : > { %p1821_p9 = scmp.eq.s32.totalorder %s1533_s16, 0  ;;  %p1561_p10 = pnand %p1063_p7, %p116_p8 }
   0xf   : > { %s1485_s25 = smov [#allocation2]   ;;  %s1389_s30 = scalar_lea.hbm %s1818_s1, 1536 }
  0x10   : > { %s1826_s24 = scalar_select %p1561_p10, 1, 0 }
  0x11   : > { %s128_s26 = sshll.u32 %s1485_s25, 4  ;;  %p1252_p11 = pneg %p1561_p10  ;;  %s129_s26 = int_to_ptr.vmem [resolvable:$true] %s128_s26 }
  0x12   : > { %p1390_p13 = scmp.ne.s32.totalorder %s1818_s1, %s1389_s30  ;;  %p1396_p3 = scmp.lt.u32.totalorder %s1389_s30, %s1818_s1 }
  0x13   : > { %p1569_p12 = pnand %p1821_p9, %p1252_p11 }
  0x15   : > { %p1391_p0 = pneg %p1569_p12 }
  0x17   : > { %p1392_p1 = pnand %p1391_p0, %p1390_p13 }
  0x19   : > { %p1393_p2 = pneg %p1392_p1 }
  0x1b   : > { %p1398_p4 = pnand %p1396_p3, %p1393_p2 }
  0x1d   : > { %1401 = shalt.err (!%p1398_p4)
}
  0x1e   : > { %s1402_s8 = scalar_lea.vmem %s129_s26, 1536  ;;  %p1410_p9 = scmp.lt.s32.totalorder %s129_s26, %s129_s26 }
  0x1f   : > { %p1403_p7 = scmp.ne.s32.totalorder %s129_s26, %s1402_s8  ;;  %p1411_p6 = scmp.lt.s32.totalorder %s1402_s8, %s1402_s8 }
  0x21   : > { %p1405_p8 = pnand %p1403_p7, %p1391_p0  ;;  %p1412_p5 = por %p1411_p6, %p1410_p9 }
  0x23   : > { %p1406_p11 = pneg %p1405_p8 }
  0x25   : > { %p1413_p10 = pnand %p1412_p5, %p1406_p11 }
  0x27   : > { %1416 = shalt.err (!%p1413_p10)
}
  0x28   : > { %s1486_s9 = smov 192   ;;  %s1487_s10 = smov 12  }
  0x29   : > { %1255 = dma.hbm_to_vmem [thread:$0]  (!%p1569_p12), %s1818_s1, 1536, %s129_s26, [#allocation3], %s1486_s9, %s1486_s9, %s1487_s10  }
  0x2a   : > { %p1828_p13 = scmp.ne.s32.totalorder %s1826_s24, 0 }
  0x2b   : > { %p1829_p1 = scmp.eq.s32.totalorder (!%p1828_p13), %s1533_s16, 0 }
  0x2c   : > { %155 = sbr.rel (%p1828_p13) target bundleno = 985 (0x3d9), region = 32 }
  0x33   : > { %1462 = dma.done.wait (%p1829_p1), [#allocation3], 1536   ;;  %p1830_p0 = pmov %p1829_p1 }
  0x34   : > { %p179_p5 = scmp.lt.s32.totalorder %s1533_s16, 1  ;;  %v1488_v0 = vmov 0   ;;  %v1301_v1 = vld [vmem:[#allocation2 + $0x4] ss:$12 sps:$4 sm:$0xff]   ;;  %v1303_v2 = vld [vmem:[#allocation2] ss:$12 sps:$4 sm:$0xff]  }
  0x35   : > { %1464 = vsyncadd (%p1830_p0), [#allocation3], 4294965760  ;;  %378 = vmatprep.mubr.bf16.mxu0 %v1488_v0  ;;  %346 = vmatprep.subr.bf16.mxu0 %v1301_v1  ;;  %v1304_v3 = vld [vmem:[#allocation2 + $0x1c] ss:$12 sps:$4 sm:$0xff]   ;;  %v1306_v4 = vld [vmem:[#allocation2 + $0x18] ss:$12 sps:$4 sm:$0xff]  }
  0x36   : > { %s180_s19 = scalar_select %p179_p5, %s1533_s16, 1  ;;  %347 = vmatpush1.bf16.msra.mxu0 %v1303_v2  ;;  %v1307_v5 = vld [vmem:[#allocation2 + $0x34] ss:$12 sps:$4 sm:$0xff]   ;;  %vm321_vm0 = vcmask 523264   ;;  %v1309_v7 = vld [vmem:[#allocation2 + $0x30] ss:$12 sps:$4 sm:$0xff]  }
  0x37   : > { %348 = vmatprep.subr.bf16.mxu0 %v1304_v3  ;;  %v1310_v8 = vld [vmem:[#allocation2 + $0x4c] ss:$12 sps:$4 sm:$0xff]   ;;  %v1312_v9 = vld [vmem:[#allocation2 + $0x48] ss:$12 sps:$4 sm:$0xff]   ;;  %v1324_v20 = vld [vmem:[#allocation2 + $0x50] ss:$12 sps:$4 sm:$0xff]  }
  0x38   : > { %s1112_s20 = sshll.u32 %s180_s19, 6  ;;  %v1321_v17 = vld [vmem:[#allocation2 + $0x8] ss:$12 sps:$4 sm:$0xff]   ;;  %v1322_v18 = vld [vmem:[#allocation2 + $0x20] ss:$12 sps:$4 sm:$0xff]   ;;  %p1831_p9 = scmp.ne.s32.totalorder %s1824_s22, 0 }
  0x39   : > { %s1600_s26 = scalar_lea.vmem %s1817_s0, %s1112_s20  ;;  %1158 = vmatprep.subr.bf16.mxu1 %v1321_v17  ;;  %v1323_v19 = vld [vmem:[#allocation2 + $0x38] ss:$12 sps:$4 sm:$0xff]   ;;  %s176_s20 = sand.u32 1, %s1475_s13  }
  0x3a   : > { %v1313_v6 = vld [vmem:[%s1600_s26] sm:$0xff]   ;;  %349 = vmatpush1.bf16.msra.mxu0 %v1306_v4  ;;  %v1314_v10 = vld [vmem:[%s1600_s26 + $0x8] sm:$0xff]   ;;  %v1315_v11 = vld [vmem:[%s1600_s26 + $0x10] sm:$0xff]   ;;  %1159 = vmatpush3.bf16.msra.mxu1 %v1321_v17  ;;  %s1068_s24 = sshll.u32 %s176_s20, 7  ;;  %s1489_s5 = smov [#allocation5]  }
  0x3b   : > { %350 = vmatprep.subr.bf16.mxu0 %v1307_v5  ;;  %1166 = vmatprep.mubr.msk.bf16.mxu1 %vm321_vm0, %v1313_v6  ;;  %v1316_v12 = vld [vmem:[%s1600_s26 + $0x18] sm:$0xff]   ;;  %v1317_v13 = vld [vmem:[%s1600_s26 + $0x20] sm:$0xff]   ;;  %v1318_v14 = vld [vmem:[%s1600_s26 + $0x28] sm:$0xff]   ;;  %s1747_s25 = scalar_lea.vmem [#allocation5], %s1068_s24  ;;  %s1421_s6 = sshll.u32 %s1489_s5, 4  ;;  %s1422_s6 = int_to_ptr.vmem [resolvable:$false] %s1421_s6 }
  0x3c   : > { %v1319_v15 = vld [vmem:[%s1600_s26 + $0x30] sm:$0xff]   ;;  %v1320_v16 = vld [vmem:[%s1600_s26 + $0x38] sm:$0xff]   ;;  %1160 = vmatprep.subr.bf16.mxu1 %v1322_v18  ;;  %s1113_s26 = sshll.u32 %s1533_s16, 11  ;;  %s988_s27 = sshll.u32 %s1747_s25, 4  ;;  %s1769_s27 = int_to_ptr.vmem [resolvable:$true] %s988_s27 }
  0x3d   : > { %s1767_s30 = scalar_lea.hbm %s1820_s3, %s1113_s26  ;;  %s1776_s16 = scalar_lea.sflag [#allocation4], %s176_s20 }
  0x3e   : > { %351 = vmatpush1.bf16.msra.mxu0 %v1309_v7  ;;  %1161 = vmatpush3.bf16.msra.mxu1 %v1322_v18  ;;  %s1417_s4 = scalar_lea.vmem %s1769_s27, 2048  ;;  %s1423_s7 = scalar_lea.vmem %s1422_s6, 4096 }
  0x3f   : > { %352 = vmatprep.subr.bf16.mxu0 %v1310_v8  ;;  %1162 = vmatprep.subr.bf16.mxu1 %v1323_v19  ;;  %p1418_p6 = scmp.ne.s32.totalorder %s1769_s27, %s1417_s4  ;;  %p1424_p2 = scmp.lt.s32.totalorder %s1769_s27, %s1422_s6 }
  0x40   : > { %p1425_p3 = scmp.lt.s32.totalorder %s1423_s7, %s1417_s4 }
  0x41   : > { %p1419_p10 = pnand %p1418_p6, %p1831_p9 }
  0x42   : > { %353 = vmatpush1.bf16.msra.mxu0 %v1312_v9  ;;  %1163 = vmatpush3.bf16.msra.mxu1 %v1323_v19  ;;  %p1426_p4 = por %p1425_p3, %p1424_p2 }
  0x43   : > { %1164 = vmatprep.subr.bf16.mxu1 %v1324_v20  ;;  %p1420_p12 = pneg %p1419_p10 }
  0x45   : > { %1091 = vmatmul.mubr.msk.bf16.vlgmr.msra.gmra.mrb[0].mxu0 %vm321_vm0, %v1313_v6  ;;  %p1427_p7 = pnand %p1426_p4, %p1420_p12 }
  0x46   : > { %388 = vmatprep.mubr.bf16.mxu0 %v1488_v0  ;;  %1165 = vmatpush3.bf16.msra.mxu1 %v1324_v20 }
  0x49   : > { %1167 = vmatmul.mubr.msk.bf16.vlgmr.msra.gmra.mrb[0].mxu1 %vm321_vm0, %v1314_v10 }
  0x4a   : > { %1170 = vmatprep.mubr.msk.bf16.mxu1 %vm321_vm0, %v1315_v11 }
  0x4d   : > { %1092 = vmatmul.mubr.msk.bf16.gmra.mrb[4].mxu0 %vm321_vm0, %v1314_v10 }
  0x4e   : > { %398 = vmatprep.mubr.bf16.mxu0 %v1488_v0 }
  0x51   : > { %1171 = vmatmul.mubr.msk.bf16.gmra.mrb[4].mxu1 %vm321_vm0, %v1316_v12 }
  0x52   : > { %1174 = vmatprep.mubr.msk.bf16.mxu1 %vm321_vm0, %v1317_v13 }
  0x55   : > { %1093 = vmatmul.mubr.msk.bf16.gmra.mrb[8].mxu0 %vm321_vm0, %v1315_v11 }
  0x56   : > { %408 = vmatprep.mubr.bf16.mxu0 %v1488_v0 }
  0x59   : > { %1175 = vmatmul.mubr.msk.bf16.gmra.mrb[8].mxu1 %vm321_vm0, %v1318_v14 }
  0x5a   : > { %1178 = vmatprep.mubr.msk.bf16.mxu1 %vm321_vm0, %v1319_v15 }
  0x5d   : > { %1094 = vmatmul.mubr.msk.bf16.gmra.mrb[12].mxu0 %vm321_vm0, %v1316_v12 }
  0x5e   : > { %418 = vmatprep.mubr.bf16.mxu0 %v1488_v0 }
  0x61   : > { %1179 = vmatmul.mubr.msk.bf16.gmra.mrb[12].mxu1 %vm321_vm0, %v1320_v16 }
  0x65   : > { %1095 = vmatmul.mubr.msk.bf16.gmra.mrb[16].mxu0 %vm321_vm0, %v1317_v13 }
  0x66   : > { %428 = vmatprep.mubr.bf16.mxu0 %v1488_v0 }
  0x6d   : > { %1096 = vmatmul.mubr.msk.bf16.gmra.mrb[20].mxu0 %vm321_vm0, %v1318_v14 }
  0x6e   : > { %438 = vmatprep.mubr.bf16.mxu0 %v1488_v0 }
  0x75   : > { %1097 = vmatmul.mubr.msk.bf16.gmra.mrb[24].mxu0 %vm321_vm0, %v1319_v15 }
  0x76   : > { %448 = vmatprep.mubr.bf16.mxu0 %v1488_v0 }
  0x7d   : > { %1098 = vmatmul.mubr.msk.bf16.gmra.mrb[28].mxu0 %vm321_vm0, %v1320_v16 }
 0x118   : > { %v380_v21 = vpop.f32.mrb[0].mxu0 }
 0x119   : > { %v382_v22 = vpop.f32.mrb[1].mxu0 }
 0x11a   : > { %v384_v23 = vpop.f32.mrb[2].mxu0  ;;  %v556_v26 = vmul.f32 0.17677669, %v382_v22 }
 0x11b   : > { %v580_v24 = vpack.c.bf16 %v384_v23, %v380_v21  ;;  %v386_v25 = vpop.f32.mrb[3].mxu0 }
 0x11c   : > { %v557_v27 = vmul.f32 0.17677669, %v386_v25  ;;  %v1168_v21 = vpop.f32.mrb[0].mxu1 }
 0x11d   : > { %1182 = vmatprep.subr.bf16.mxu0 %v580_v24  ;;  %v493_v22 = vpop.f32.mrb[1].mxu1 }
 0x11e   : > { %v572_v28 = vpack.c.bf16 %v557_v27, %v556_v26  ;;  %1183 = vmatpush3.bf16.xpose.msra.mxu0 %v580_v24  ;;  %v1169_v23 = vpop.f32.mrb[2].mxu1 }
 0x11f   : > { %v822_v24 = vpack.c.bf16 %v1169_v23, %v1168_v21  ;;  %v496_v25 = vpop.f32.mrb[3].mxu1  ;;  %v602_v23 = vld [vmem:[%s1819_s2 + $0x70] sm:$0xff] }
 0x120   : > { %v390_v29 = vpop.f32.mrb[4].mxu0  ;;  %1198 = vmatprep.mubr.bf16.mxu0 %v572_v28  ;;  %v821_v26 = vpack.c.bf16 %v496_v25, %v493_v22 }
 0x121   : > { %v392_v30 = vpop.f32.mrb[5].mxu0 }
 0x122   : > { %v394_v31 = vpop.f32.mrb[6].mxu0  ;;  %v1626_v34 = vmul.f32 0.17677669, %v392_v30  ;;  %1214 = vmatprep.subr.bf16.mxu1 %v821_v26 }
 0x123   : > { %v581_v32 = vpack.c.bf16 %v394_v31, %v390_v29  ;;  %v396_v33 = vpop.f32.mrb[7].mxu0  ;;  %1215 = vmatpush3.bf16.msra.mxu1 %v821_v26  ;;  %v603_v26 = vld [vmem:[%s1819_s2 + $0x78] sm:$0xff] }
 0x124   : > { %v1628_v35 = vmul.f32 0.17677669, %v396_v33  ;;  %v1172_v27 = vpop.f32.mrb[4].mxu1  ;;  %1216 = vmatprep.subr.bf16.mxu1 %v822_v24 }
 0x125   : > { %1184 = vmatprep.subr.bf16.mxu0 %v581_v32  ;;  %v509_v28 = vpop.f32.mrb[5].mxu1 }
 0x126   : > { %v573_v36 = vpack.c.bf16 %v1628_v35, %v1626_v34  ;;  %1185 = vmatpush3.bf16.xpose.msra.mxu0 %v581_v32  ;;  %v1173_v29 = vpop.f32.mrb[6].mxu1 }
 0x127   : > { %v824_v30 = vpack.c.bf16 %v1173_v29, %v1172_v27  ;;  %v512_v31 = vpop.f32.mrb[7].mxu1  ;;  %1217 = vmatpush3.bf16.msra.mxu1 %v822_v24 }
 0x128   : > { %v400_v37 = vpop.f32.mrb[8].mxu0  ;;  %v823_v32 = vpack.c.bf16 %v512_v31, %v509_v28 }
 0x129   : > { %v402_v38 = vpop.f32.mrb[9].mxu0 }
 0x12a   : > { %v404_v39 = vpop.f32.mrb[10].mxu0  ;;  %v560_v42 = vmul.f32 0.17677669, %v402_v38  ;;  %1218 = vmatprep.subr.bf16.mxu1 %v823_v32 }
 0x12b   : > { %v582_v40 = vpack.c.bf16 %v404_v39, %v400_v37  ;;  %v406_v41 = vpop.f32.mrb[11].mxu0  ;;  %1219 = vmatpush3.bf16.msra.mxu1 %v823_v32  ;;  %v590_v39 = vld [vmem:[%s1819_s2 + $0x10] sm:$0xff] }
 0x12c   : > { %v561_v43 = vmul.f32 0.17677669, %v406_v41  ;;  %v1176_v33 = vpop.f32.mrb[8].mxu1  ;;  %1220 = vmatprep.subr.bf16.mxu1 %v824_v30 }
 0x12d   : > { %1186 = vmatprep.subr.bf16.mxu0 %v582_v40  ;;  %v525_v34 = vpop.f32.mrb[9].mxu1 }
 0x12e   : > { %v574_v44 = vpack.c.bf16 %v561_v43, %v560_v42  ;;  %1187 = vmatpush3.bf16.xpose.msra.mxu0 %v582_v40  ;;  %v1177_v35 = vpop.f32.mrb[10].mxu1  ;;  %v588_v40 = vld [vmem:[%s1819_s2] sm:$0xff] }
 0x12f   : > { %v528_v37 = vpop.f32.mrb[11].mxu1  ;;  %1221 = vmatpush3.bf16.msra.mxu1 %v824_v30 }
 0x130   : > { %v410_v45 = vpop.f32.mrb[12].mxu0  ;;  %v825_v38 = vpack.c.bf16 %v528_v37, %v525_v34 }
 0x131   : > { %v412_v46 = vpop.f32.mrb[13].mxu0 }
 0x132   : > { %v414_v47 = vpop.f32.mrb[14].mxu0  ;;  %v562_v50 = vmul.f32 0.17677669, %v412_v46  ;;  %1222 = vmatprep.subr.bf16.mxu1 %v825_v38 }
 0x133   : > { %v583_v48 = vpack.c.bf16 %v414_v47, %v410_v45  ;;  %v416_v49 = vpop.f32.mrb[15].mxu0  ;;  %1223 = vmatpush3.bf16.msra.mxu1 %v825_v38  ;;  %v591_v45 = vld [vmem:[%s1819_s2 + $0x18] sm:$0xff] }
 0x134   : > { %v563_v51 = vmul.f32 0.17677669, %v416_v49 }
 0x135   : > { %1188 = vmatprep.subr.bf16.mxu0 %v583_v48 }
 0x136   : > { %v575_v52 = vpack.c.bf16 %v563_v51, %v562_v50  ;;  %1189 = vmatpush3.bf16.xpose.msra.mxu0 %v583_v48  ;;  %v589_v48 = vld [vmem:[%s1819_s2 + $0x8] sm:$0xff]  ;;  %v592_v51 = vld [vmem:[%s1819_s2 + $0x20] sm:$0xff] }
 0x138   : > { %v420_v53 = vpop.f32.mrb[16].mxu0 }
 0x139   : > { %v422_v54 = vpop.f32.mrb[17].mxu0 }
 0x13a   : > { %v424_v55 = vpop.f32.mrb[18].mxu0  ;;  %v564_v58 = vmul.f32 0.17677669, %v422_v54  ;;  %v593_v54 = vld [vmem:[%s1819_s2 + $0x28] sm:$0xff] }
 0x13b   : > { %v584_v56 = vpack.c.bf16 %v424_v55, %v420_v53  ;;  %v426_v57 = vpop.f32.mrb[19].mxu0 }
 0x13c   : > { %v565_v59 = vmul.f32 0.17677669, %v426_v57  ;;  %v594_v57 = vld [vmem:[%s1819_s2 + $0x30] sm:$0xff] }
 0x13d   : > { %1190 = vmatprep.subr.bf16.mxu0 %v584_v56 }
 0x13e   : > { %v576_v60 = vpack.c.bf16 %v565_v59, %v564_v58  ;;  %1191 = vmatpush3.bf16.xpose.msra.mxu0 %v584_v56 }
 0x140   : > { %v430_v61 = vpop.f32.mrb[20].mxu0 }
 0x141   : > { %v432_v62 = vpop.f32.mrb[21].mxu0 }
 0x142   : > { %v434_v63 = vpop.f32.mrb[22].mxu0  ;;  %v566_v2 = vmul.f32 0.17677669, %v432_v62  ;;  %v596_v62 = vld [vmem:[%s1819_s2 + $0x40] sm:$0xff] }
 0x143   : > { %v585_v0 = vpack.c.bf16 %v434_v63, %v430_v61  ;;  %v436_v1 = vpop.f32.mrb[23].mxu0 }
 0x144   : > { %v567_v3 = vmul.f32 0.17677669, %v436_v1 }
 0x145   : > { %1192 = vmatprep.subr.bf16.mxu0 %v585_v0 }
 0x146   : > { %v577_v4 = vpack.c.bf16 %v567_v3, %v566_v2  ;;  %1193 = vmatpush3.bf16.xpose.msra.mxu0 %v585_v0  ;;  %v597_v2 = vld [vmem:[%s1819_s2 + $0x48] sm:$0xff] }
 0x148   : > { %v440_v5 = vpop.f32.mrb[24].mxu0 }
 0x149   : > { %v442_v6 = vpop.f32.mrb[25].mxu0 }
 0x14a   : > { %v444_v7 = vpop.f32.mrb[26].mxu0  ;;  %v568_v10 = vmul.f32 0.17677669, %v442_v6 }
 0x14b   : > { %v586_v8 = vpack.c.bf16 %v444_v7, %v440_v5  ;;  %v446_v9 = vpop.f32.mrb[27].mxu0  ;;  %v598_v5 = vld [vmem:[%s1819_s2 + $0x50] sm:$0xff]  ;;  %v1180_v7 = vpop.f32.mrb[12].mxu1 }
 0x14c   : > { %v569_v11 = vmul.f32 0.17677669, %v446_v9  ;;  %v541_v9 = vpop.f32.mrb[13].mxu1 }
 0x14d   : > { %1194 = vmatprep.subr.bf16.mxu0 %v586_v8 }
 0x14e   : > { %v578_v12 = vpack.c.bf16 %v569_v11, %v568_v10  ;;  %1195 = vmatpush3.bf16.xpose.msra.mxu0 %v586_v8  ;;  %v599_v10 = vld [vmem:[%s1819_s2 + $0x58] sm:$0xff]  ;;  %v1181_v11 = vpop.f32.mrb[14].mxu1 }
 0x150   : > { %v450_v13 = vpop.f32.mrb[28].mxu0 }
 0x151   : > { %v452_v14 = vpop.f32.mrb[29].mxu0 }
 0x152   : > { %v454_v15 = vpop.f32.mrb[30].mxu0  ;;  %v570_v18 = vmul.f32 0.17677669, %v452_v14  ;;  %v600_v14 = vld [vmem:[%s1819_s2 + $0x60] sm:$0xff] }
 0x153   : > { %v587_v16 = vpack.c.bf16 %v454_v15, %v450_v13  ;;  %v456_v17 = vpop.f32.mrb[31].mxu0  ;;  %v544_v13 = vpop.f32.mrb[15].mxu1 }
 0x154   : > { %v571_v19 = vmul.f32 0.17677669, %v456_v17  ;;  %v827_v15 = vpack.c.bf16 %v544_v13, %v541_v9 }
 0x155   : > { %1196 = vmatprep.subr.bf16.mxu0 %v587_v16 }
 0x156   : > { %v579_v20 = vpack.c.bf16 %v571_v19, %v570_v18  ;;  %1197 = vmatpush3.bf16.xpose.msra.mxu0 %v587_v16  ;;  %v601_v19 = vld [vmem:[%s1819_s2 + $0x68] sm:$0xff] }
 0x15d   : > { %1199 = vmatmul.mubr.bf16.vlgmr.msra.gmra.mrb[32].mxu0 %v573_v36  ;;  %v826_v36 = vpack.c.bf16 %v1177_v35, %v1176_v33 }
 0x15e   : > { %1202 = vmatprep.mubr.bf16.mxu0 %v574_v44 }
 0x15f   : > { %1224 = vmatprep.subr.bf16.mxu1 %v826_v36 }
 0x160   : > { %1225 = vmatpush3.bf16.msra.mxu1 %v826_v36 }
 0x161   : > { %1226 = vmatprep.subr.bf16.mxu1 %v827_v15 }
 0x164   : > { %1227 = vmatpush3.bf16.msra.mxu1 %v827_v15 }
 0x165   : > { %1203 = vmatmul.mubr.bf16.gmra.mrb[36].mxu0 %v575_v52 }
 0x166   : > { %1206 = vmatprep.mubr.bf16.mxu0 %v576_v60  ;;  %v595_v60 = vld [vmem:[%s1819_s2 + $0x38] sm:$0xff] }
 0x16d   : > { %1207 = vmatmul.mubr.bf16.gmra.mrb[40].mxu0 %v577_v4 }
 0x16e   : > { %1210 = vmatprep.mubr.bf16.mxu0 %v578_v12 }
 0x175   : > { %1211 = vmatmul.mubr.bf16.gmra.mrb[44].mxu0 %v579_v20  ;;  %v828_v20 = vpack.c.bf16 %v1181_v11, %v1180_v7 }
 0x177   : > { %1228 = vmatprep.subr.bf16.mxu1 %v828_v20 }
 0x178   : > { %1229 = vmatpush3.bf16.msra.mxu1 %v828_v20 }
 0x230   : > { %v1200_v41 = vpop.f32.mrb[32].mxu0 }
 0x231   : > { %v1638_v42 = vadd.f32 %v1200_v41, %v590_v39  ;;  %v638_v43 = vpop.f32.mrb[33].mxu0 }
 0x232   : > { %v1640_v44 = vadd.f32 %v638_v43, %v588_v40  ;;  %v1201_v46 = vpop.f32.mrb[34].mxu0 }
 0x233   : > { %705 = vmax.xlane.f32.xlu1 %v1638_v42  ;;  %v641_v47 = vpop.f32.mrb[35].mxu0  ;;  %v1650_v49 = vadd.f32 %v1201_v46, %v591_v45 }
 0x234   : > { %701 = vmax.xlane.f32.xlu0 %v1640_v44  ;;  %v1652_v50 = vadd.f32 %v641_v47, %v589_v48 }
 0x237   : > { %707 = vmax.xlane.f32.xlu1 %v1650_v49 }
 0x238   : > { %v1204_v52 = vpop.f32.mrb[36].mxu0  ;;  %703 = vmax.xlane.f32.xlu0 %v1652_v50 }
 0x239   : > { %v654_v53 = vpop.f32.mrb[37].mxu0  ;;  %v1673_v61 = vadd.f32 %v1204_v52, %v594_v57 }
 0x23a   : > { %v1662_v55 = vadd.f32 %v654_v53, %v592_v51  ;;  %v1205_v56 = vpop.f32.mrb[38].mxu0 }
 0x23b   : > { %v657_v58 = vpop.f32.mrb[39].mxu0  ;;  %v1679_v63 = vadd.f32 %v1205_v56, %v595_v60 }
 0x23c   : > { %v1667_v59 = vadd.f32 %v657_v58, %v593_v54  ;;  %709 = vmax.xlane.f32.xlu0 %v1662_v55 }
 0x23e   : > { %711 = vmax.xlane.f32.xlu1 %v1667_v59 }
 0x240   : > { %v1208_v0 = vpop.f32.mrb[40].mxu0  ;;  %713 = vmax.xlane.f32.xlu0 %v1673_v61 }
 0x241   : > { %v670_v1 = vpop.f32.mrb[41].mxu0  ;;  %v1697_v12 = vadd.f32 %v1208_v0, %v598_v5 }
 0x242   : > { %v1685_v3 = vadd.f32 %v670_v1, %v596_v62  ;;  %v1209_v4 = vpop.f32.mrb[42].mxu0  ;;  %715 = vmax.xlane.f32.xlu1 %v1679_v63 }
 0x243   : > { %v673_v6 = vpop.f32.mrb[43].mxu0  ;;  %v1703_v16 = vadd.f32 %v1209_v4, %v599_v10 }
 0x244   : > { %v1691_v8 = vadd.f32 %v673_v6, %v597_v2  ;;  %717 = vmax.xlane.f32.xlu0 %v1685_v3 }
 0x246   : > { %719 = vmax.xlane.f32.xlu1 %v1691_v8 }
 0x248   : > { %721 = vmax.xlane.f32.xlu0 %v1697_v12  ;;  %v1212_v17 = vpop.f32.mrb[44].mxu0 }
 0x249   : > { %v686_v18 = vpop.f32.mrb[45].mxu0  ;;  %v1721_v27 = vadd.f32 %v1212_v17, %v602_v23 }
 0x24a   : > { %v1709_v21 = vadd.f32 %v686_v18, %v600_v14  ;;  %723 = vmax.xlane.f32.xlu1 %v1703_v16  ;;  %v1213_v22 = vpop.f32.mrb[46].mxu0 }
 0x24b   : > { %v689_v24 = vpop.f32.mrb[47].mxu0  ;;  %v1724_v28 = vadd.f32 %v1213_v22, %v603_v26 }
 0x24c   : > { %v1715_v25 = vadd.f32 %v689_v24, %v601_v19  ;;  %725 = vmax.xlane.f32.xlu0 %v1709_v21 }
 0x24e   : > { %727 = vmax.xlane.f32.xlu1 %v1715_v25 }
 0x250   : > { %729 = vmax.xlane.f32.xlu0 %v1721_v27 }
 0x252   : > { %731 = vmax.xlane.f32.xlu1 %v1724_v28 }
 0x2c0   : > { %v706_v29 = vpop.xlane.xlu1 %705 }
 0x2c1   : > { %v735_v30 = vsub.f32 %v1638_v42, %v706_v29  ;;  %v702_v31 = vpop.xlane.xlu0 %701 }
 0x2c2   : > { %v733_v32 = vsub.f32 %v1640_v44, %v702_v31 }
 0x2c3   : > { %v753_v33 = vmul.f32 1.442695, %v735_v30 }
 0x2c4   : > { %v749_v34 = vmul.f32 1.442695, %v733_v32  ;;  %v708_v35 = vpop.xlane.xlu1 %707 }
 0x2c5   : > { %1325 = vpow2.f32 %v753_v33  ;;  %v736_v36 = vsub.f32 %v1650_v49, %v708_v35  ;;  %v704_v37 = vpop.xlane.xlu0 %703 }
 0x2c6   : > { %v734_v38 = vsub.f32 %v1652_v50, %v704_v37  ;;  %1327 = vpow2.f32 %v749_v34 }
 0x2c7   : > { %v755_v39 = vmul.f32 1.442695, %v736_v36 }
 0x2c8   : > { %v751_v40 = vmul.f32 1.442695, %v734_v38 }
 0x2c9   : > { %1329 = vpow2.f32 %v755_v39  ;;  %v710_v41 = vpop.xlane.xlu0 %709 }
 0x2ca   : > { %1331 = vpow2.f32 %v751_v40  ;;  %v737_v42 = vsub.f32 %v1662_v55, %v710_v41 }
 0x2cb   : > { %v712_v43 = vpop.xlane.xlu1 %711 }
 0x2cc   : > { %v757_v45 = vmul.f32 1.442695, %v737_v42  ;;  %v738_v44 = vsub.f32 %v1667_v59, %v712_v43 }
 0x2cd   : > { %v714_v46 = vpop.xlane.xlu0 %713 }
 0x2ce   : > { %v759_v47 = vmul.f32 1.442695, %v738_v44  ;;  %v739_v48 = vsub.f32 %v1673_v61, %v714_v46  ;;  %1333 = vpow2.f32 %v757_v45 }
 0x2cf   : > { %v1326_v49 = vpop.eup %1325  ;;  %v716_v51 = vpop.xlane.xlu1 %715 }
 0x2d0   : > { %1335 = vpow2.f32 %v759_v47  ;;  %v761_v50 = vmul.f32 1.442695, %v739_v48  ;;  %v740_v52 = vsub.f32 %v1679_v63, %v716_v51  ;;  %785 = vadd.xlane.f32.xlu0 %v1326_v49  ;;  %v1328_v54 = vpop.eup %1327 }
 0x2d1   : > { %v718_v53 = vpop.xlane.xlu0 %717 }
 0x2d2   : > { %1337 = vpow2.f32 %v761_v50  ;;  %v763_v55 = vmul.f32 1.442695, %v740_v52  ;;  %v741_v56 = vsub.f32 %v1685_v3, %v718_v53 }
 0x2d3   : > { %v1330_v57 = vpop.eup %1329  ;;  %v720_v58 = vpop.xlane.xlu1 %719 }
 0x2d4   : > { %v1332_v59 = vpop.eup %1331  ;;  %1339 = vpow2.f32 %v763_v55  ;;  %v765_v60 = vmul.f32 1.442695, %v741_v56  ;;  %v742_v61 = vsub.f32 %v1691_v8, %v720_v58  ;;  %787 = vadd.xlane.f32.xlu1 %v1330_v57  ;;  %781 = vadd.xlane.f32.xlu0 %v1328_v54  ;;  %v814_v2 = vpack.c.bf16 %v1330_v57, %v1326_v49 }
 0x2d5   : > { %v722_v62 = vpop.xlane.xlu0 %721  ;;  %v813_v0 = vpack.c.bf16 %v1332_v59, %v1328_v54 }
 0x2d6   : > { %v767_v1 = vmul.f32 1.442695, %v742_v61  ;;  %v743_v63 = vsub.f32 %v1697_v12, %v722_v62  ;;  %1341 = vpow2.f32 %v765_v60 }
 0x2d7   : > { %v724_v4 = vpop.xlane.xlu1 %723  ;;  %1230 = vmatprep.mubr.bf16.mxu1 %v813_v0 }
 0x2d8   : > { %1343 = vpow2.f32 %v767_v1  ;;  %v769_v3 = vmul.f32 1.442695, %v743_v63  ;;  %v744_v5 = vsub.f32 %v1703_v16, %v724_v4  ;;  %1231 = vmatmul.mubr.bf16.vlgmr.msra.gmra.mrb[16].mxu1 %v814_v2  ;;  %783 = vadd.xlane.f32.xlu1 %v1332_v59  ;;  %v1334_v6 = vpop.eup %1333 }
 0x2d9   : > { %v726_v7 = vpop.xlane.xlu0 %725 }
 0x2da   : > { %v1336_v8 = vpop.eup %1335  ;;  %1345 = vpow2.f32 %v769_v3  ;;  %v771_v9 = vmul.f32 1.442695, %v744_v5  ;;  %v745_v10 = vsub.f32 %v1709_v21, %v726_v7 }
 0x2db   : > { %v728_v11 = vpop.xlane.xlu1 %727  ;;  %v815_v13 = vpack.c.bf16 %v1336_v8, %v1334_v6 }
 0x2dc   : > { %v1338_v12 = vpop.eup %1337  ;;  %1347 = vpow2.f32 %v771_v9  ;;  %v773_v14 = vmul.f32 1.442695, %v745_v10  ;;  %v746_v15 = vsub.f32 %v1715_v25, %v728_v11 }
 0x2dd   : > { %1234 = vmatprep.mubr.bf16.mxu1 %v815_v13  ;;  %793 = vadd.xlane.f32.xlu0 %v1338_v12  ;;  %v730_v17 = vpop.xlane.xlu0 %729 }
 0x2de   : > { %v1340_v16 = vpop.eup %1339  ;;  %v775_v18 = vmul.f32 1.442695, %v746_v15  ;;  %v747_v19 = vsub.f32 %v1721_v27, %v730_v17  ;;  %1349 = vpow2.f32 %v773_v14 }
 0x2df   : > { %795 = vadd.xlane.f32.xlu1 %v1340_v16  ;;  %v732_v20 = vpop.xlane.xlu1 %731  ;;  %v816_v22 = vpack.c.bf16 %v1340_v16, %v1338_v12 }
 0x2e0   : > { %1351 = vpow2.f32 %v775_v18  ;;  %v777_v21 = vmul.f32 1.442695, %v747_v19  ;;  %v748_v23 = vsub.f32 %v1724_v28, %v732_v20  ;;  %v1342_v24 = vpop.eup %1341 }
 0x2e1   : > { %1235 = vmatmul.mubr.bf16.gmra.mrb[20].mxu1 %v816_v22  ;;  %789 = vadd.xlane.f32.xlu0 %v1334_v6 }
 0x2e2   : > { %v1344_v26 = vpop.eup %1343  ;;  %v779_v25 = vmul.f32 1.442695, %v748_v23  ;;  %1353 = vpow2.f32 %v777_v21 }
 0x2e3   : > { %791 = vadd.xlane.f32.xlu1 %v1336_v8  ;;  %v817_v29 = vpack.c.bf16 %v1344_v26, %v1342_v24 }
 0x2e4   : > { %v1346_v30 = vpop.eup %1345  ;;  %1355 = vpow2.f32 %v779_v25 }
 0x2e5   : > { %1238 = vmatprep.mubr.bf16.mxu1 %v817_v29  ;;  %801 = vadd.xlane.f32.xlu0 %v1346_v30 }
 0x2e6   : > { %v1348_v27 = vpop.eup %1347 }
 0x2e7   : > { %803 = vadd.xlane.f32.xlu1 %v1348_v27  ;;  %v818_v31 = vpack.c.bf16 %v1348_v27, %v1346_v30 }
 0x2e8   : > { %v1350_v32 = vpop.eup %1349 }
 0x2e9   : > { %1239 = vmatmul.mubr.bf16.gmra.mrb[24].mxu1 %v818_v31  ;;  %797 = vadd.xlane.f32.xlu0 %v1342_v24 }
 0x2ea   : > { %v1352_v33 = vpop.eup %1351 }
 0x2eb   : > { %799 = vadd.xlane.f32.xlu1 %v1344_v26  ;;  %v819_v28 = vpack.c.bf16 %v1352_v33, %v1350_v32 }
 0x2ec   : > { %v1354_v34 = vpop.eup %1353 }
 0x2ed   : > { %805 = vadd.xlane.f32.xlu0 %v1350_v32  ;;  %1242 = vmatprep.mubr.bf16.mxu1 %v819_v28 }
 0x2ee   : > { %v1356_v35 = vpop.eup %1355 }
 0x2ef   : > { %807 = vadd.xlane.f32.xlu1 %v1352_v33  ;;  %v820_v36 = vpack.c.bf16 %v1356_v35, %v1354_v34 }
 0x2f1   : > { %809 = vadd.xlane.f32.xlu0 %v1354_v34  ;;  %1243 = vmatmul.mubr.bf16.gmra.mrb[28].mxu1 %v820_v36 }
 0x2f3   : > { %811 = vadd.xlane.f32.xlu1 %v1356_v35 }
 0x35d   : > { %v786_v37 = vpop.xlane.xlu0 %785 }
 0x35e   : > { %1357 = vrcp.f32 %v786_v37 }
 0x361   : > { %v788_v38 = vpop.xlane.xlu1 %787  ;;  %v782_v39 = vpop.xlane.xlu0 %781 }
 0x362   : > { %1359 = vrcp.f32 %v782_v39 }
 0x363   : > { %1361 = vrcp.f32 %v788_v38 }
 0x365   : > { %v784_v40 = vpop.xlane.xlu1 %783 }
 0x366   : > { %1363 = vrcp.f32 %v784_v40 }
 0x368   : > { %v1358_v47 = vpop.eup %1357 }
 0x36a   : > { %v794_v41 = vpop.xlane.xlu0 %793 }
 0x36b   : > { %1365 = vrcp.f32 %v794_v41 }
 0x36c   : > { %v796_v42 = vpop.xlane.xlu1 %795  ;;  %v1360_v51 = vpop.eup %1359 }
 0x36d   : > { %v1362_v53 = vpop.eup %1361 }
 0x36e   : > { %v790_v43 = vpop.xlane.xlu0 %789 }
 0x36f   : > { %1367 = vrcp.f32 %v790_v43 }
 0x370   : > { %v792_v45 = vpop.xlane.xlu1 %791  ;;  %1369 = vrcp.f32 %v796_v42  ;;  %v1364_v57 = vpop.eup %1363 }
 0x371   : > { %1371 = vrcp.f32 %v792_v45 }
 0x372   : > { %v802_v44 = vpop.xlane.xlu0 %801 }
 0x373   : > { %1373 = vrcp.f32 %v802_v44 }
 0x374   : > { %v804_v46 = vpop.xlane.xlu1 %803 }
 0x375   : > { %v1366_v0 = vpop.eup %1365 }
 0x376   : > { %v798_v48 = vpop.xlane.xlu0 %797 }
 0x377   : > { %1375 = vrcp.f32 %v798_v48 }
 0x378   : > { %v800_v54 = vpop.xlane.xlu1 %799  ;;  %1377 = vrcp.f32 %v804_v46 }
 0x379   : > { %v1368_v63 = vpop.eup %1367  ;;  %1379 = vrcp.f32 %v800_v54 }
 0x37a   : > { %v806_v61 = vpop.xlane.xlu0 %805  ;;  %v1370_v3 = vpop.eup %1369 }
 0x37b   : > { %v1372_v7 = vpop.eup %1371 }
 0x37c   : > { %v808_v62 = vpop.xlane.xlu1 %807 }
 0x37d   : > { %v1374_v12 = vpop.eup %1373 }
 0x37e   : > { %v810_v8 = vpop.xlane.xlu0 %809 }
 0x37f   : > { %1381 = vrcp.f32 %v810_v8 }
 0x380   : > { %v812_v13 = vpop.xlane.xlu1 %811  ;;  %1383 = vrcp.f32 %v806_v61 }
 0x381   : > { %1385 = vrcp.f32 %v812_v13  ;;  %v1376_v15 = vpop.eup %1375 }
 0x382   : > { %1387 = vrcp.f32 %v808_v62  ;;  %v1378_v18 = vpop.eup %1377 }
 0x383   : > { %v1380_v22 = vpop.eup %1379 }
 0x389   : > { %v1382_v26 = vpop.eup %1381 }
 0x38a   : > { %v1384_v29 = vpop.eup %1383 }
 0x38b   : > { %v1386_v31 = vpop.eup %1385 }
 0x38c   : > { %v1388_v28 = vpop.eup %1387 }
 0x3ab   : > { %v1232_v49 = vpop.f32.mrb[16].mxu1 }
 0x3ac   : > { %v944_v50 = vmul.f32 %v1358_v47, %v1232_v49  ;;  %v863_v52 = vpop.f32.mrb[17].mxu1 }
 0x3ad   : > { %v942_v55 = vmul.f32 %v1360_v51, %v863_v52  ;;  %v1233_v56 = vpop.f32.mrb[18].mxu1 }
 0x3ae   : > { %960 = vst [vmem:[%s1747_s25 + $0x10] sm:$0xff] %v944_v50  ;;  %v945_v58 = vmul.f32 %v1362_v53, %v1233_v56  ;;  %v866_v59 = vpop.f32.mrb[19].mxu1 }
 0x3af   : > { %958 = vst [vmem:[%s1747_s25] sm:$0xff] %v942_v55  ;;  %v943_v60 = vmul.f32 %v1364_v57, %v866_v59 }
 0x3b0   : > { %961 = vst [vmem:[%s1747_s25 + $0x18] sm:$0xff] %v945_v58 }
 0x3b1   : > { %959 = vst [vmem:[%s1747_s25 + $0x8] sm:$0xff] %v943_v60 }
 0x3b4   : > { %v1236_v1 = vpop.f32.mrb[20].mxu1 }
 0x3b5   : > { %v948_v2 = vmul.f32 %v1366_v0, %v1236_v1  ;;  %v879_v4 = vpop.f32.mrb[21].mxu1 }
 0x3b6   : > { %v946_v5 = vmul.f32 %v1368_v63, %v879_v4  ;;  %v1237_v6 = vpop.f32.mrb[22].mxu1 }
 0x3b7   : > { %964 = vst [vmem:[%s1747_s25 + $0x30] sm:$0xff] %v948_v2  ;;  %v949_v9 = vmul.f32 %v1370_v3, %v1237_v6  ;;  %v882_v10 = vpop.f32.mrb[23].mxu1 }
 0x3b8   : > { %962 = vst [vmem:[%s1747_s25 + $0x20] sm:$0xff] %v946_v5  ;;  %v947_v11 = vmul.f32 %v1372_v7, %v882_v10 }
 0x3b9   : > { %965 = vst [vmem:[%s1747_s25 + $0x38] sm:$0xff] %v949_v9 }
 0x3ba   : > { %963 = vst [vmem:[%s1747_s25 + $0x28] sm:$0xff] %v947_v11 }
 0x3bc   : > { %v1240_v14 = vpop.f32.mrb[24].mxu1 }
 0x3bd   : > { %v952_v17 = vmul.f32 %v1374_v12, %v1240_v14  ;;  %v895_v16 = vpop.f32.mrb[25].mxu1 }
 0x3be   : > { %v950_v19 = vmul.f32 %v1376_v15, %v895_v16  ;;  %v1241_v20 = vpop.f32.mrb[26].mxu1 }
 0x3bf   : > { %968 = vst [vmem:[%s1747_s25 + $0x50] sm:$0xff] %v952_v17  ;;  %v953_v21 = vmul.f32 %v1378_v18, %v1241_v20  ;;  %v898_v23 = vpop.f32.mrb[27].mxu1 }
 0x3c0   : > { %966 = vst [vmem:[%s1747_s25 + $0x40] sm:$0xff] %v950_v19  ;;  %v951_v24 = vmul.f32 %v1380_v22, %v898_v23 }
 0x3c1   : > { %969 = vst [vmem:[%s1747_s25 + $0x58] sm:$0xff] %v953_v21 }
 0x3c2   : > { %967 = vst [vmem:[%s1747_s25 + $0x48] sm:$0xff] %v951_v24 }
 0x3c4   : > { %v1244_v25 = vpop.f32.mrb[28].mxu1 }
 0x3c5   : > { %v956_v30 = vmul.f32 %v1382_v26, %v1244_v25  ;;  %v911_v27 = vpop.f32.mrb[29].mxu1 }
 0x3c6   : > { %v954_v32 = vmul.f32 %v1384_v29, %v911_v27  ;;  %v1245_v33 = vpop.f32.mrb[30].mxu1 }
 0x3c7   : > { %972 = vst [vmem:[%s1747_s25 + $0x70] sm:$0xff] %v956_v30  ;;  %v957_v34 = vmul.f32 %v1386_v31, %v1245_v33  ;;  %v914_v35 = vpop.f32.mrb[31].mxu1 }
 0x3c8   : > { %970 = vst [vmem:[%s1747_s25 + $0x60] sm:$0xff] %v954_v32  ;;  %v955_v36 = vmul.f32 %v1388_v28, %v914_v35 }
 0x3c9   : > { %973 = vst [vmem:[%s1747_s25 + $0x78] sm:$0xff] %v957_v34 }
 0x3ca   : > { %971 = vst [vmem:[%s1747_s25 + $0x68] sm:$0xff] %v955_v36 }
 0x3cb   : > { %1430 = shalt.err (!%p1427_p7)
}
 0x3cc   : > { %s1431_s8 = scalar_lea.hbm %s1767_s30, 2048  ;;  %s1435_s11 = scalar_lea.hbm %s1820_s3, 4096 }
 0x3cd   : > { %p1432_p8 = scmp.ne.s32.totalorder %s1767_s30, %s1431_s8  ;;  %p1436_p1 = scmp.lt.u32.totalorder %s1767_s30, %s1820_s3 }
 0x3ce   : > { %p1437_p0 = scmp.lt.u32.totalorder %s1435_s11, %s1431_s8  ;;  %p1439_p6 = scmp.lt.u32.totalorder %s1431_s8, %s1767_s30 }
 0x3cf   : > { %p1433_p11 = pnand %p1432_p8, %p1831_p9 }
 0x3d0   : > { %p1438_p5 = por %p1437_p0, %p1436_p1 }
 0x3d1   : > { %p1434_p13 = pneg %p1433_p11 }
 0x3d2   : > { %p1440_p10 = por %p1439_p6, %p1438_p5 }
 0x3d4   : > { %p1441_p12 = pnand %p1440_p10, %p1434_p13 }
 0x3d6   : > { %1444 = shalt.err (!%p1441_p12)
}
 0x3d7   : > { %s1490_s20 = smov 128   ;;  %s1491_s24 = smov 8  }
 0x3d8   : > { %1250 = dma.vmem_to_hbm [thread:$0]  (%p1831_p9), %s1769_s27, 2048, %s1767_s30, %s1776_s16, %s1490_s20, %s1490_s20, %s1491_s24  }
 0x3d9 PF: > { %p1262_p2 = scmp.ge.s32.totalorder %s1483_s15, 2  ;;  %s1003_s25 = sand.u32 1, %s1471_s12  }
 0x3da   : > { %p1832_p3 = scmp.ne.s32.totalorder %s1825_s23, 0  ;;  %s1004_s26 = scalar_lea.sflag [#allocation4], %s1003_s25 }
 0x3dc   : > { %p1257_p4 = pnand %p1262_p2, %p1832_p3 }
 0x3de   : > { %1466 = dma.done.wait (!%p1257_p4), %s1004_s26, 2048  }
 0x3df   : > { %1468 = vsyncadd (!%p1257_p4), %s1004_s26, 4294965248  ;;  %p14_p7 = scmp.ge.s32.totalorder %s1537_s18, 4   ;;  %s1833_s12 = smov %s1475_s13 }
 0x3e0   : > { %s1834_s13 = smov %s1479_s14  ;;  %s1835_s14 = smov %s1548_s21 }
 0x3e1   : > { %s1836_s15 = smov %s1537_s18  ;;  %16 = sbr.rel (!%p14_p7) target bundleno = 4 (0x4), region = 72 }
 0x3e8   :  { %1009 = vsyncpa [#allocation3], 1 }
 0x3e9   :  { %1011 = vsyncpa [#allocation3 + $0x1], 1 }
 0x3ea   :  { %1012 = vsyncpa [#allocation4], 1 }
 0x3eb   :  { %1014 = vsyncpa [#allocation4 + $0x1], 1 }

</bundles_post_ra>
